<compile_context>
chip_gen: v7x
topology: tpu7x:2x2x1
jax: 0.10.0
libtpu: 0.0.40
codegen_flags: <defaults>
</compile_context>

<pallas_src>
import math

import jax
import jax.numpy as jnp
from jax.experimental import pallas as pl
from jax.experimental.pallas import tpu as pltpu

LN_EPS = 1e-5
SINGLE_BUFFER_WEIGHTS = True   # Buffered(1) on grid-invariant operands


# ----------------------------- small helpers ---------------------------------

def _round_up(x, m):
    return ((x + m - 1) // m) * m


def _pad2(a, shape):
    pads = tuple((0, t - s) for s, t in zip(a.shape, shape))
    if all(p == (0, 0) for p in pads):
        return a
    return jnp.pad(a, pads)


def _sublane_pack(dtype):
    # rows per packed 32-bit sublane group: 8 (f32), 16 (bf16), 32 (int8/fp8)
    return 32 // jnp.dtype(dtype).itemsize


def _vmem_capacity_bytes():
    try:
        return int(pltpu.get_tpu_info().vmem_capacity_bytes)
    except Exception:
        return 64 << 20          # conservative default: v7x per-TC VMEM


def _num_tensorcores():
    # >1 only if the runtime exposes a megacore-style multi-TC device; grid
    # splitting for "parallel" sharding only pays off in that case.
    try:
        return max(1, int(getattr(jax.devices()[0], "num_cores", 1)))
    except Exception:
        return 1


# ----------------------------- kernel pieces ---------------------------------

def _layernorm_f32(x, gamma, beta):
    x = x.astype(jnp.float32)
    mean = jnp.mean(x, axis=-1, keepdims=True)
    var = jnp.mean(jnp.square(x - mean), axis=-1, keepdims=True)
    xn = (x - mean) * jax.lax.rsqrt(var + LN_EPS)
    return xn * gamma.astype(jnp.float32) + beta.astype(jnp.float32)


def _gelu_f32(h, approx):
    if approx:
        # tanh form: transcendental goes to the (otherwise idle) EUP slot.
        return jax.nn.gelu(h, approximate=True)
    # exact erf form: matches torch.nn.GELU() default semantics.
    return 0.5 * h * (1.0 + jax.lax.erf(h * (1.0 / math.sqrt(2.0))))


def _make_resident_kernel(approx_gelu, with_hidden):
    """All weights VMEM-resident; 1-D grid over batch tiles."""
    def kernel(x_ref, g_ref, be_ref, w1_ref, b1_ref, w2_ref, b2_ref, *out_refs):
        logits_ref = out_refs[0]
        hidden_ref = out_refs[1] if with_hidden else None

        xn = _layernorm_f32(x_ref[...], g_ref[...], be_ref[...])
        # Dropout(p=0.5): identity at inference.
        # TODO(synk): training-mode dropout (stateful PRNG masking) not implemented.
        h = jnp.dot(xn.astype(w1_ref.dtype), w1_ref[...],
                    preferred_element_type=jnp.float32)
        h = _gelu_f32(h + b1_ref[...].astype(jnp.float32), approx_gelu)
        if hidden_ref is not None:
            hidden_ref[...] = h.astype(hidden_ref.dtype)
        # Dropout(p=0.3): identity at inference.
        logits = jnp.dot(h.astype(w2_ref.dtype), w2_ref[...],
                         preferred_element_type=jnp.float32)
        logits_ref[...] = (logits + b2_ref[...].astype(jnp.float32)
                           ).astype(logits_ref.dtype)
    return kernel


def _make_chunked_kernel(approx_gelu, with_hidden):
    """H-chunked fallback: grid=(batch tiles, H chunks).  w1/b1/w2 are streamed,
    logits accumulate in f32 VMEM scratch, LayerNorm(x) cached in VMEM scratch."""
    def kernel(x_ref, g_ref, be_ref, w1_ref, b1_ref, w2_ref, b2_ref, *rest):
        if with_hidden:
            logits_ref, hidden_ref, xn_scr, acc_scr = rest
        else:
            logits_ref, xn_scr, acc_scr = rest
            hidden_ref = None

        hk = pl.program_id(1)

        @pl.when(hk == 0)
        def _():
            xn = _layernorm_f32(x_ref[...], g_ref[...], be_ref[...])
            xn_scr[...] = xn.astype(xn_scr.dtype)
            acc_scr[...] = jnp.zeros_like(acc_scr)

        # Dropout layers: identity at inference (see TODO above).
        h = jnp.dot(xn_scr[...], w1_ref[...], preferred_element_type=jnp.float32)
        h = _gelu_f32(h + b1_ref[...].astype(jnp.float32), approx_gelu)
        if hidden_ref is not None:
            hidden_ref[...] = h.astype(hidden_ref.dtype)
        acc_scr[...] += jnp.dot(h.astype(w2_ref.dtype), w2_ref[...],
                                preferred_element_type=jnp.float32)

        @pl.when(hk == pl.num_programs(1) - 1)
        def _():
            logits_ref[...] = (acc_scr[...] + b2_ref[...].astype(jnp.float32)
                               ).astype(logits_ref.dtype)
    return kernel


# ------------------------------ param prep ------------------------------------

def prepare_params(params):
    """One-time repack: pad H/C to 128-lane multiples, reshape LN/bias to (1, N).

    Call this ONCE at init.  The padding is a full HBM pass over the weights and
    must stay off the per-step hot path.
    """
    D, H = params["w1"].shape
    C = params["w2"].shape[1]
    Hp = _round_up(H, 128)
    Cp = _round_up(C, 128)
    prepared = dict(
        gamma=jnp.reshape(params["gamma"], (1, D)),
        beta=jnp.reshape(params["beta"], (1, D)),
        w1=_pad2(params["w1"], (D, Hp)),
        b1=_pad2(jnp.reshape(params["b1"], (1, H)), (1, Hp)),
        w2=_pad2(params["w2"], (Hp, Cp)),
        b2=_pad2(jnp.reshape(params["b2"], (1, C)), (1, Cp)),
    )
    meta = dict(in_features=D, hidden_dim=H, num_classes=C, Hp=Hp, Cp=Cp)
    return prepared, meta


# ------------------------------ tiling heuristics -----------------------------

def _auto_batch_tile(B, pack, per_row_bytes, avail_bytes, num_cores):
    Bp = _round_up(B, pack)
    cap = 1024                                   # amortize ~0.35us per-step overhead
    if per_row_bytes > 0:
        cap = min(cap, max(pack, (max(avail_bytes, 0) // per_row_bytes)
                           // pack * pack))
    tile = max(pack, min(cap, Bp) // pack * pack)
    # Only split the batch when multiple TensorCores can actually share the
    # "parallel" axis; on single-TC chips (v5e/v6e) the grid is a serial loop.
    while num_cores > 1 and Bp // tile < num_cores and tile > pack:
        tile = max(pack, (tile // 2) // pack * pack)
    # Prefer a tile that divides Bp: no ragged tail, no x padding pass.
    t = tile
    while t > pack and Bp % t != 0:
        t -= pack
    if Bp % t == 0 and t >= max(pack, tile // 4):
        tile = t
    return tile


def _auto_h_tile(Hp, D, Cp, w_bytes, avail_bytes):
    # Largest multiple of 128 dividing Hp whose (double-buffered) streamed
    # chunk of w1 columns + w2 rows fits the weight budget.
    for m in range(Hp // 128, 0, -1):
        ht = m * 128
        if Hp % ht:
            continue
        streamed = 2 * (D * ht + ht * Cp + ht) * w_bytes
        if streamed <= avail_bytes:
            return ht
    return 128


# --------------------------------- wrapper ------------------------------------

def multitask_head(x, prepared, meta, *, batch_tile=None, h_tile=None,
                   approximate_gelu=False, return_hidden=True, hidden_dtype=None):
    """x: [B, in_features] -> (logits [B, C], hidden [B, H]) or logits only."""
    B, D = x.shape
    assert D == meta["in_features"]
    H, C = meta["hidden_dim"], meta["num_classes"]
    Hp, Cp = meta["Hp"], meta["Cp"]

    act_bytes = jnp.dtype(x.dtype).itemsize
    w_bytes = jnp.dtype(prepared["w1"].dtype).itemsize
    hidden_dtype = jnp.dtype(hidden_dtype) if hidden_dtype is not None else jnp.dtype(x.dtype)
    hid_bytes = hidden_dtype.itemsize if return_hidden else 0

    pack = max(8, _sublane_pack(x.dtype))
    capacity = _vmem_capacity_bytes()
    budget = int(capacity * 0.85)
    num_cores = _num_tensorcores()

    wbuf = 1 if SINGLE_BUFFER_WEIGHTS else 2
    w_resident = wbuf * (D * Hp + Hp * Cp + 2 * D + Hp + Cp) * w_bytes
    use_chunked = (h_tile is not None) or (w_resident + (8 << 20) > budget)

    # ---- pick tiles, grid, specs for the chosen path ----
    if not use_chunked:
        per_row = (2 * D * act_bytes + 2 * Cp * act_bytes
                   + 2 * Hp * hid_bytes
                   + 4 * (D + Hp + Cp))          # f32 intermediates headroom
        avail = budget - w_resident - (4 << 20)
        if batch_tile is None:
            batch_tile = _auto_batch_tile(B, pack, per_row, avail, num_cores)
        else:
            batch_tile = max(pack, _round_up(batch_tile, pack))
        Bp = _round_up(B, batch_tile)
        grid = (Bp // batch_tile,)
        dim_sem = ("parallel",)
        kernel = _make_chunked_kernel  # placeholder replaced below
        kernel = _make_resident_kernel(approximate_gelu, return_hidden)
        scratch_shapes = []
        out_specs = [pl.BlockSpec((batch_tile, Cp), lambda i: (i, 0))]
        out_shape = [jax.ShapeDtypeStruct((Bp, Cp), x.dtype)]
        if return_hidden:
            out_specs.append(pl.BlockSpec((batch_tile, Hp), lambda i: (i, 0)))
            out_shape.append(jax.ShapeDtypeStruct((Bp, Hp), hidden_dtype))
        need = (w_resident
                + 2 * batch_tile * (D + Cp) * act_bytes
                + 2 * batch_tile * Hp * hid_bytes
                + 4 * batch_tile * (D + Hp + Cp)
                + (4 << 20))

        def build_in_specs(single_buffer):
            def inv(shape, index_map):
                if single_buffer:
                    return pl.BlockSpec(shape, index_map,
                                        pipeline_mode=pl.Buffered(1))
                return pl.BlockSpec(shape, index_map)
            return [
                pl.BlockSpec((batch_tile, D), lambda i: (i, 0)),   # x (streamed)
                inv((1, D), lambda i: (0, 0)),                     # gamma
                inv((1, D), lambda i: (0, 0)),                     # beta
                inv((D, Hp), lambda i: (0, 0)),                    # w1
                inv((1, Hp), lambda i: (0, 0)),                    # b1
                inv((Hp, Cp), lambda i: (0, 0)),                   # w2
                inv((1, Cp), lambda i: (0, 0)),                    # b2
            ]
    else:
        if batch_tile is None:
            batch_tile = max(pack, min(256, _round_up(B, pack)) // pack * pack)
        else:
            batch_tile = max(pack, _round_up(batch_tile, pack))
        if h_tile is None:
            h_tile = _auto_h_tile(Hp, D, Cp, w_bytes, budget // 2)
        assert h_tile % 128 == 0 and Hp % h_tile == 0
        Bp = _round_up(B, batch_tile)
        grid = (Bp // batch_tile, Hp // h_tile)
        dim_sem = ("parallel", "arbitrary")
        kernel = _make_chunked_kernel(approximate_gelu, return_hidden)
        scratch_shapes = [
            pltpu.VMEM((batch_tile, D), prepared["w1"].dtype),   # cached LayerNorm(x)
            pltpu.VMEM((batch_tile, Cp), jnp.float32),           # logits accumulator
        ]
        out_specs = [pl.BlockSpec((batch_tile, Cp), lambda i, k: (i, 0))]
        out_shape = [jax.ShapeDtypeStruct((Bp, Cp), x.dtype)]
        if return_hidden:
            out_specs.append(pl.BlockSpec((batch_tile, h_tile), lambda i, k: (i, k)))
            out_shape.append(jax.ShapeDtypeStruct((Bp, Hp), hidden_dtype))
        need = (2 * (D * h_tile + h_tile * Cp + h_tile) * w_bytes
                + (2 * D + Cp) * w_bytes
                + 2 * batch_tile * (D + Cp) * act_bytes
                + 2 * batch_tile * h_tile * hid_bytes
                + batch_tile * D * w_bytes + 4 * batch_tile * Cp
                + 4 * batch_tile * (h_tile + Cp)
                + (4 << 20))

        def build_in_specs(single_buffer):
            def inv(shape, index_map):
                if single_buffer:
                    return pl.BlockSpec(shape, index_map,
                                        pipeline_mode=pl.Buffered(1))
                return pl.BlockSpec(shape, index_map)
            return [
                pl.BlockSpec((batch_tile, D), lambda i, k: (i, 0)),   # x
                inv((1, D), lambda i, k: (0, 0)),                     # gamma
                inv((1, D), lambda i, k: (0, 0)),                     # beta
                pl.BlockSpec((D, h_tile), lambda i, k: (0, k)),       # w1 (streamed)
                pl.BlockSpec((1, h_tile), lambda i, k: (0, k)),       # b1 (streamed)
                pl.BlockSpec((h_tile, Cp), lambda i, k: (k, 0)),      # w2 (streamed)
                inv((1, Cp), lambda i, k: (0, 0)),                    # b2
            ]

    # TODO(synk): mask the ragged tail tile in-kernel instead of padding x
    # (the pad is an extra HBM pass over x when B is not a tile multiple).
    xp = x if Bp == B else jnp.pad(x, ((0, Bp - B), (0, 0)))

    vmem_limit = int(min(max(need, 16 << 20), capacity))
    cost = pl.CostEstimate(
        flops=2 * Bp * (D * Hp + Hp * Cp),
        transcendentals=Bp * Hp,
        bytes_accessed=(Bp * D * act_bytes
                        + (D * Hp + Hp * Cp + 2 * D + Hp + Cp) * w_bytes
                        + Bp * Cp * act_bytes
                        + (Bp * Hp * hid_bytes if return_hidden else 0)),
    )

    def run(single_buffer):
        return pl.pallas_call(
            kernel,
            grid=grid,
            in_specs=build_in_specs(single_buffer),
            out_specs=out_specs,
            out_shape=out_shape,
            scratch_shapes=scratch_shapes,
            compiler_params=pltpu.CompilerParams(
                dimension_semantics=dim_sem,
                vmem_limit_bytes=vmem_limit),
            cost_estimate=cost,
        )(xp, prepared["gamma"], prepared["beta"], prepared["w1"],
          prepared["b1"], prepared["w2"], prepared["b2"])

    try:
        outs = run(SINGLE_BUFFER_WEIGHTS)
    except Exception:
        if not SINGLE_BUFFER_WEIGHTS:
            raise
        outs = run(False)   # fall back to default double-buffering

    if return_hidden:
        logits_p, hidden_p = outs
        return logits_p[:B, :C], hidden_p[:B, :H]
    (logits_p,) = outs
    return logits_p[:B, :C]


# ------------------------- params / reference / test --------------------------

def init_params(key, in_features, hidden_dim, num_classes, dtype=jnp.float32):
    k1, k2, k3, k4 = jax.random.split(key, 4)
    gamma = jnp.ones((in_features,), dtype)              # torch LayerNorm default
    beta = jnp.zeros((in_features,), dtype)
    lim1 = 1.0 / math.sqrt(in_features)                  # torch Linear default init
    w1 = jax.random.uniform(k1, (in_features, hidden_dim), dtype, -lim1, lim1)
    b1 = jax.random.uniform(k2, (hidden_dim,), dtype, -lim1, lim1)
    lim2 = 1.0 / math.sqrt(hidden_dim)
    w2 = jax.random.uniform(k3, (hidden_dim, num_classes), dtype, -lim2, lim2)
    b2 = jax.random.uniform(k4, (num_classes,), dtype, -lim2, lim2)
    return dict(gamma=gamma, beta=beta, w1=w1, b1=b1, w2=w2, b2=b2)


def reference(x, p):
    xf = x.astype(jnp.float32)
    mean = jnp.mean(xf, -1, keepdims=True)
    var = jnp.mean((xf - mean) ** 2, -1, keepdims=True)
    xn = (xf - mean) / jnp.sqrt(var + LN_EPS) * p["gamma"] + p["beta"]
    h = xn @ p["w1"] + p["b1"]
    h = 0.5 * h * (1.0 + jax.lax.erf(h / math.sqrt(2.0)))
    logits = h @ p["w2"] + p["b2"]
    return logits.astype(x.dtype), h.astype(x.dtype)


if __name__ == "__main__":
    key = jax.random.PRNGKey(0)
    kx, kp, kx2, kp2 = jax.random.split(key, 4)

    # ---- fully-resident path -------------------------------------------------
    B, D, H, C = 16, 32, 32, 16
    x = jax.random.normal(kx, (B, D), jnp.float32)
    params = init_params(kp, D, H, C)
    prepared, meta = prepare_params(params)        # one-time weight repack

    logits, hidden = multitask_head(x, prepared, meta)
    jax.block_until_ready((logits, hidden))
    ref_logits, ref_hidden = reference(x, params)
    assert logits.shape == (B, C) and hidden.shape == (B, H)
    assert jnp.allclose(logits, ref_logits, atol=1e-4, rtol=1e-4)
    assert jnp.allclose(hidden, ref_hidden, atol=1e-4, rtol=1e-4)

    # logits-only path (drops the hidden HBM writeback stream)
    logits_only = multitask_head(x, prepared, meta, return_hidden=False)
    jax.block_until_ready(logits_only)
    assert jnp.allclose(logits_only, ref_logits, atol=1e-4, rtol=1e-4)

    # ---- H-chunked (weight-streaming) fallback path, forced via h_tile --------
    B2, D2, H2, C2 = 24, 32, 320, 16               # Hp=384 -> 3 chunks of 128
    x2 = jax.random.normal(kx2, (B2, D2), jnp.float32)
    params2 = init_params(kp2, D2, H2, C2)
    prepared2, meta2 = prepare_params(params2)

    logits2, hidden2 = multitask_head(x2, prepared2, meta2, h_tile=128)
    jax.block_until_ready((logits2, hidden2))
    ref_logits2, ref_hidden2 = reference(x2, params2)
    assert logits2.shape == (B2, C2) and hidden2.shape == (B2, H2)
    assert jnp.allclose(logits2, ref_logits2, atol=1e-4, rtol=1e-4)
    assert jnp.allclose(hidden2, ref_hidden2, atol=1e-4, rtol=1e-4)

    print("KERNEL_OK")
</pallas_src>

<mosaic_0001>
module attributes {stable_mosaic.version = 11 : i64} {
  func.func @kernel(%arg0: i32, %arg1: memref<16x32xf32, #tpu.memory_space<vmem>>, %arg2: memref<1x32xf32, #tpu.memory_space<vmem>>, %arg3: memref<1x32xf32, #tpu.memory_space<vmem>>, %arg4: memref<32x128xf32, #tpu.memory_space<vmem>>, %arg5: memref<1x128xf32, #tpu.memory_space<vmem>>, %arg6: memref<128x128xf32, #tpu.memory_space<vmem>>, %arg7: memref<1x128xf32, #tpu.memory_space<vmem>>, %arg8: memref<16x128xf32, #tpu.memory_space<vmem>>, %arg9: memref<16x128xf32, #tpu.memory_space<vmem>>) attributes {dimension_semantics = [#tpu.dimension_semantics<parallel>], iteration_bounds = array<i64: 1>, scalar_prefetch = 0 : i64, scratch_operands = 0 : i64, tpu.core_type = #tpu.core_type<tc>, window_params = [{transform_indices = @transform_0, window_bounds = array<i64: 16, 32>}, {pipeline_mode = #tpu.pipeline_mode<synchronous>, transform_indices = @transform_1, window_bounds = array<i64: 1, 32>}, {pipeline_mode = #tpu.pipeline_mode<synchronous>, transform_indices = @transform_2, window_bounds = array<i64: 1, 32>}, {pipeline_mode = #tpu.pipeline_mode<synchronous>, transform_indices = @transform_3, window_bounds = array<i64: 32, 128>}, {pipeline_mode = #tpu.pipeline_mode<synchronous>, transform_indices = @transform_4, window_bounds = array<i64: 1, 128>}, {pipeline_mode = #tpu.pipeline_mode<synchronous>, transform_indices = @transform_5, window_bounds = array<i64: 128, 128>}, {pipeline_mode = #tpu.pipeline_mode<synchronous>, transform_indices = @transform_6, window_bounds = array<i64: 1, 128>}, {transform_indices = @transform_7, window_bounds = array<i64: 16, 128>}, {transform_indices = @transform_8, window_bounds = array<i64: 16, 128>}]} {
    %c0 = arith.constant 0 : index
    %c0_0 = arith.constant 0 : index
    %0 = vector.load %arg1[%c0, %c0_0] : memref<16x32xf32, #tpu.memory_space<vmem>>, vector<16x32xf32>
    %c0_1 = arith.constant 0 : index
    %c0_2 = arith.constant 0 : index
    %1 = vector.load %arg2[%c0_1, %c0_2] : memref<1x32xf32, #tpu.memory_space<vmem>>, vector<1x32xf32>
    %c0_3 = arith.constant 0 : index
    %c0_4 = arith.constant 0 : index
    %2 = vector.load %arg3[%c0_3, %c0_4] : memref<1x32xf32, #tpu.memory_space<vmem>>, vector<1x32xf32>
    %cst = arith.constant dense<0.000000e+00> : vector<16xf32>
    %3 = vector.multi_reduction <add>, %0, %cst [1] : vector<16x32xf32> to vector<16xf32>
    %4 = vector.shape_cast %3 : vector<16xf32> to vector<16x1xf32>
    %cst_5 = arith.constant 3.200000e+01 : f32
    %5 = vector.broadcast %cst_5 : f32 to vector<16x1xf32>
    %6 = arith.divf %4, %5 : vector<16x1xf32>
    %7 = vector.broadcast %6 : vector<16x1xf32> to vector<16x32xf32>
    %8 = arith.subf %0, %7 : vector<16x32xf32>
    %9 = arith.mulf %8, %8 : vector<16x32xf32>
    %cst_6 = arith.constant dense<0.000000e+00> : vector<16xf32>
    %10 = vector.multi_reduction <add>, %9, %cst_6 [1] : vector<16x32xf32> to vector<16xf32>
    %11 = vector.shape_cast %10 : vector<16xf32> to vector<16x1xf32>
    %cst_7 = arith.constant 3.200000e+01 : f32
    %12 = vector.broadcast %cst_7 : f32 to vector<16x1xf32>
    %13 = arith.divf %11, %12 : vector<16x1xf32>
    %14 = vector.broadcast %6 : vector<16x1xf32> to vector<16x32xf32>
    %15 = arith.subf %0, %14 : vector<16x32xf32>
    %cst_8 = arith.constant 9.99999974E-6 : f32
    %16 = vector.broadcast %cst_8 : f32 to vector<16x1xf32>
    %17 = arith.addf %13, %16 : vector<16x1xf32>
    %18 = math.rsqrt %17 : vector<16x1xf32>
    %19 = vector.broadcast %18 : vector<16x1xf32> to vector<16x32xf32>
    %20 = arith.mulf %15, %19 : vector<16x32xf32>
    %21 = vector.broadcast %1 : vector<1x32xf32> to vector<16x32xf32>
    %22 = arith.mulf %20, %21 : vector<16x32xf32>
    %23 = vector.broadcast %2 : vector<1x32xf32> to vector<16x32xf32>
    %24 = arith.addf %22, %23 : vector<16x32xf32>
    %c0_9 = arith.constant 0 : index
    %c0_10 = arith.constant 0 : index
    %25 = vector.load %arg4[%c0_9, %c0_10] : memref<32x128xf32, #tpu.memory_space<vmem>>, vector<32x128xf32>
    %cst_11 = arith.constant dense<0.000000e+00> : vector<16x128xf32>
    %26 = tpu.matmul %24, %25, %cst_11 {dimension_numbers = #tpu.dot_dimension_numbers<[1], [0], [0], [1], [0, 0, 1, 1], [], []>} : vector<16x32xf32>, vector<32x128xf32>, vector<16x128xf32> -> vector<16x128xf32>
    %c0_12 = arith.constant 0 : index
    %c0_13 = arith.constant 0 : index
    %27 = vector.load %arg5[%c0_12, %c0_13] : memref<1x128xf32, #tpu.memory_space<vmem>>, vector<1x128xf32>
    %28 = vector.broadcast %27 : vector<1x128xf32> to vector<16x128xf32>
    %29 = arith.addf %26, %28 : vector<16x128xf32>
    %cst_14 = arith.constant 5.000000e-01 : f32
    %30 = vector.broadcast %cst_14 : f32 to vector<16x128xf32>
    %31 = arith.mulf %30, %29 : vector<16x128xf32>
    %cst_15 = arith.constant 0.707106769 : f32
    %32 = vector.broadcast %cst_15 : f32 to vector<16x128xf32>
    %33 = arith.mulf %29, %32 : vector<16x128xf32>
    %34 = math.erf %33 : vector<16x128xf32>
    %cst_16 = arith.constant 1.000000e+00 : f32
    %35 = vector.broadcast %cst_16 : f32 to vector<16x128xf32>
    %36 = arith.addf %35, %34 : vector<16x128xf32>
    %37 = arith.mulf %31, %36 : vector<16x128xf32>
    %c0_17 = arith.constant 0 : index
    %c0_18 = arith.constant 0 : index
    %38 = vector.load %arg9[%c0_17, %c0_18] : memref<16x128xf32, #tpu.memory_space<vmem>>, vector<16x128xf32>
    tpu.vector_store %arg9[%c0_17, %c0_18], %37 {strides = array<i32>} : memref<16x128xf32, #tpu.memory_space<vmem>>, vector<16x128xf32>,
    %c0_19 = arith.constant 0 : index
    %c0_20 = arith.constant 0 : index
    %39 = vector.load %arg6[%c0_19, %c0_20] : memref<128x128xf32, #tpu.memory_space<vmem>>, vector<128x128xf32>
    %cst_21 = arith.constant dense<0.000000e+00> : vector<16x128xf32>
    %40 = tpu.matmul %37, %39, %cst_21 {dimension_numbers = #tpu.dot_dimension_numbers<[1], [0], [0], [1], [0, 0, 1, 1], [], []>} : vector<16x128xf32>, vector<128x128xf32>, vector<16x128xf32> -> vector<16x128xf32>
    %c0_22 = arith.constant 0 : index
    %c0_23 = arith.constant 0 : index
    %41 = vector.load %arg7[%c0_22, %c0_23] : memref<1x128xf32, #tpu.memory_space<vmem>>, vector<1x128xf32>
    %42 = vector.broadcast %41 : vector<1x128xf32> to vector<16x128xf32>
    %43 = arith.addf %40, %42 : vector<16x128xf32>
    %c0_24 = arith.constant 0 : index
    %c0_25 = arith.constant 0 : index
    %44 = vector.load %arg8[%c0_24, %c0_25] : memref<16x128xf32, #tpu.memory_space<vmem>>, vector<16x128xf32>
    tpu.vector_store %arg8[%c0_24, %c0_25], %43 {strides = array<i32>} : memref<16x128xf32, #tpu.memory_space<vmem>>, vector<16x128xf32>,
    return
  }
  func.func @transform_0(%arg0: i32) -> (i32, i32) {
    %c0_i32 = arith.constant 0 : i32
    %c0_i32_0 = arith.constant 0 : i32
    return %arg0, %c0_i32 : i32, i32
  }
  func.func @transform_1(%arg0: i32) -> (i32, i32) {
    %c0_i32 = arith.constant 0 : i32
    %c0_i32_0 = arith.constant 0 : i32
    %c0_i32_1 = arith.constant 0 : i32
    return %c0_i32, %c0_i32_0 : i32, i32
  }
  func.func @transform_2(%arg0: i32) -> (i32, i32) {
    %c0_i32 = arith.constant 0 : i32
    %c0_i32_0 = arith.constant 0 : i32
    %c0_i32_1 = arith.constant 0 : i32
    return %c0_i32, %c0_i32_0 : i32, i32
  }
  func.func @transform_3(%arg0: i32) -> (i32, i32) {
    %c0_i32 = arith.constant 0 : i32
    %c0_i32_0 = arith.constant 0 : i32
    %c0_i32_1 = arith.constant 0 : i32
    return %c0_i32, %c0_i32_0 : i32, i32
  }
  func.func @transform_4(%arg0: i32) -> (i32, i32) {
    %c0_i32 = arith.constant 0 : i32
    %c0_i32_0 = arith.constant 0 : i32
    %c0_i32_1 = arith.constant 0 : i32
    return %c0_i32, %c0_i32_0 : i32, i32
  }
  func.func @transform_5(%arg0: i32) -> (i32, i32) {
    %c0_i32 = arith.constant 0 : i32
    %c0_i32_0 = arith.constant 0 : i32
    %c0_i32_1 = arith.constant 0 : i32
    return %c0_i32, %c0_i32_0 : i32, i32
  }
  func.func @transform_6(%arg0: i32) -> (i32, i32) {
    %c0_i32 = arith.constant 0 : i32
    %c0_i32_0 = arith.constant 0 : i32
    %c0_i32_1 = arith.constant 0 : i32
    return %c0_i32, %c0_i32_0 : i32, i32
  }
  func.func @transform_7(%arg0: i32) -> (i32, i32) {
    %c0_i32 = arith.constant 0 : i32
    %c0_i32_0 = arith.constant 0 : i32
    return %arg0, %c0_i32 : i32, i32
  }
  func.func @transform_8(%arg0: i32) -> (i32, i32) {
    %c0_i32 = arith.constant 0 : i32
    %c0_i32_0 = arith.constant 0 : i32
    return %arg0, %c0_i32 : i32, i32
  }
}

module attributes {stable_mosaic.version = 11 : i64} {
  func.func @kernel(%arg0: i32, %arg1: memref<16x32xf32, #tpu.memory_space<vmem>>, %arg2: memref<1x32xf32, #tpu.memory_space<vmem>>, %arg3: memref<1x32xf32, #tpu.memory_space<vmem>>, %arg4: memref<32x128xf32, #tpu.memory_space<vmem>>, %arg5: memref<1x128xf32, #tpu.memory_space<vmem>>, %arg6: memref<128x128xf32, #tpu.memory_space<vmem>>, %arg7: memref<1x128xf32, #tpu.memory_space<vmem>>, %arg8: memref<16x128xf32, #tpu.memory_space<vmem>>, %arg9: memref<16x128xf32, #tpu.memory_space<vmem>>) attributes {dimension_semantics = [#tpu.dimension_semantics<parallel>], iteration_bounds = array<i64: 1>, scalar_prefetch = 0 : i64, scratch_operands = 0 : i64, tpu.core_type = #tpu.core_type<tc>, window_params = [{transform_indices = @transform_0, window_bounds = array<i64: 16, 32>}, {pipeline_mode = #tpu.pipeline_mode<synchronous>, transform_indices = @transform_1, window_bounds = array<i64: 1, 32>}, {pipeline_mode = #tpu.pipeline_mode<synchronous>, transform_indices = @transform_2, window_bounds = array<i64: 1, 32>}, {pipeline_mode = #tpu.pipeline_mode<synchronous>, transform_indices = @transform_3, window_bounds = array<i64: 32, 128>}, {pipeline_mode = #tpu.pipeline_mode<synchronous>, transform_indices = @transform_4, window_bounds = array<i64: 1, 128>}, {pipeline_mode = #tpu.pipeline_mode<synchronous>, transform_indices = @transform_5, window_bounds = array<i64: 128, 128>}, {pipeline_mode = #tpu.pipeline_mode<synchronous>, transform_indices = @transform_6, window_bounds = array<i64: 1, 128>}, {transform_indices = @transform_7, window_bounds = array<i64: 16, 128>}, {transform_indices = @transform_8, window_bounds = array<i64: 16, 128>}]} {
    %c0 = arith.constant 0 : index
    %c0_0 = arith.constant 0 : index
    %0 = vector.load %arg1[%c0, %c0_0] : memref<16x32xf32, #tpu.memory_space<vmem>>, vector<16x32xf32>
    %c0_1 = arith.constant 0 : index
    %c0_2 = arith.constant 0 : index
    %1 = vector.load %arg2[%c0_1, %c0_2] : memref<1x32xf32, #tpu.memory_space<vmem>>, vector<1x32xf32>
    %c0_3 = arith.constant 0 : index
    %c0_4 = arith.constant 0 : index
    %2 = vector.load %arg3[%c0_3, %c0_4] : memref<1x32xf32, #tpu.memory_space<vmem>>, vector<1x32xf32>
    %cst = arith.constant dense<0.000000e+00> : vector<16xf32>
    %3 = vector.multi_reduction <add>, %0, %cst [1] : vector<16x32xf32> to vector<16xf32>
    %4 = vector.shape_cast %3 : vector<16xf32> to vector<16x1xf32>
    %cst_5 = arith.constant 3.200000e+01 : f32
    %5 = vector.broadcast %cst_5 : f32 to vector<16x1xf32>
    %6 = arith.divf %4, %5 : vector<16x1xf32>
    %7 = vector.broadcast %6 : vector<16x1xf32> to vector<16x32xf32>
    %8 = arith.subf %0, %7 : vector<16x32xf32>
    %9 = arith.mulf %8, %8 : vector<16x32xf32>
    %cst_6 = arith.constant dense<0.000000e+00> : vector<16xf32>
    %10 = vector.multi_reduction <add>, %9, %cst_6 [1] : vector<16x32xf32> to vector<16xf32>
    %11 = vector.shape_cast %10 : vector<16xf32> to vector<16x1xf32>
    %cst_7 = arith.constant 3.200000e+01 : f32
    %12 = vector.broadcast %cst_7 : f32 to vector<16x1xf32>
    %13 = arith.divf %11, %12 : vector<16x1xf32>
    %14 = vector.broadcast %6 : vector<16x1xf32> to vector<16x32xf32>
    %15 = arith.subf %0, %14 : vector<16x32xf32>
    %cst_8 = arith.constant 9.99999974E-6 : f32
    %16 = vector.broadcast %cst_8 : f32 to vector<16x1xf32>
    %17 = arith.addf %13, %16 : vector<16x1xf32>
    %18 = math.rsqrt %17 : vector<16x1xf32>
    %19 = vector.broadcast %18 : vector<16x1xf32> to vector<16x32xf32>
    %20 = arith.mulf %15, %19 : vector<16x32xf32>
    %21 = vector.broadcast %1 : vector<1x32xf32> to vector<16x32xf32>
    %22 = arith.mulf %20, %21 : vector<16x32xf32>
    %23 = vector.broadcast %2 : vector<1x32xf32> to vector<16x32xf32>
    %24 = arith.addf %22, %23 : vector<16x32xf32>
    %c0_9 = arith.constant 0 : index
    %c0_10 = arith.constant 0 : index
    %25 = vector.load %arg4[%c0_9, %c0_10] : memref<32x128xf32, #tpu.memory_space<vmem>>, vector<32x128xf32>
    %cst_11 = arith.constant dense<0.000000e+00> : vector<16x128xf32>
    %26 = tpu.matmul %24, %25, %cst_11 {dimension_numbers = #tpu.dot_dimension_numbers<[1], [0], [0], [1], [0, 0, 1, 1], [], []>} : vector<16x32xf32>, vector<32x128xf32>, vector<16x128xf32> -> vector<16x128xf32>
    %c0_12 = arith.constant 0 : index
    %c0_13 = arith.constant 0 : index
    %27 = vector.load %arg5[%c0_12, %c0_13] : memref<1x128xf32, #tpu.memory_space<vmem>>, vector<1x128xf32>
    %28 = vector.broadcast %27 : vector<1x128xf32> to vector<16x128xf32>
    %29 = arith.addf %26, %28 : vector<16x128xf32>
    %cst_14 = arith.constant 5.000000e-01 : f32
    %30 = vector.broadcast %cst_14 : f32 to vector<16x128xf32>
    %31 = arith.mulf %30, %29 : vector<16x128xf32>
    %cst_15 = arith.constant 0.707106769 : f32
    %32 = vector.broadcast %cst_15 : f32 to vector<16x128xf32>
    %33 = arith.mulf %29, %32 : vector<16x128xf32>
    %34 = math.erf %33 : vector<16x128xf32>
    %cst_16 = arith.constant 1.000000e+00 : f32
    %35 = vector.broadcast %cst_16 : f32 to vector<16x128xf32>
    %36 = arith.addf %35, %34 : vector<16x128xf32>
    %37 = arith.mulf %31, %36 : vector<16x128xf32>
    %c0_17 = arith.constant 0 : index
    %c0_18 = arith.constant 0 : index
    %38 = vector.load %arg9[%c0_17, %c0_18] : memref<16x128xf32, #tpu.memory_space<vmem>>, vector<16x128xf32>
    tpu.vector_store %arg9[%c0_17, %c0_18], %37 {strides = array<i32>} : memref<16x128xf32, #tpu.memory_space<vmem>>, vector<16x128xf32>,
    %c0_19 = arith.constant 0 : index
    %c0_20 = arith.constant 0 : index
    %39 = vector.load %arg6[%c0_19, %c0_20] : memref<128x128xf32, #tpu.memory_space<vmem>>, vector<128x128xf32>
    %cst_21 = arith.constant dense<0.000000e+00> : vector<16x128xf32>
    %40 = tpu.matmul %37, %39, %cst_21 {dimension_numbers = #tpu.dot_dimension_numbers<[1], [0], [0], [1], [0, 0, 1, 1], [], []>} : vector<16x128xf32>, vector<128x128xf32>, vector<16x128xf32> -> vector<16x128xf32>
    %c0_22 = arith.constant 0 : index
    %c0_23 = arith.constant 0 : index
    %41 = vector.load %arg7[%c0_22, %c0_23] : memref<1x128xf32, #tpu.memory_space<vmem>>, vector<1x128xf32>
    %42 = vector.broadcast %41 : vector<1x128xf32> to vector<16x128xf32>
    %43 = arith.addf %40, %42 : vector<16x128xf32>
    %c0_24 = arith.constant 0 : index
    %c0_25 = arith.constant 0 : index
    %44 = vector.load %arg8[%c0_24, %c0_25] : memref<16x128xf32, #tpu.memory_space<vmem>>, vector<16x128xf32>
    tpu.vector_store %arg8[%c0_24, %c0_25], %43 {strides = array<i32>} : memref<16x128xf32, #tpu.memory_space<vmem>>, vector<16x128xf32>,
    return
  }
  func.func @transform_0(%arg0: i32) -> (i32, i32) {
    %c0_i32 = arith.constant 0 : i32
    %c0_i32_0 = arith.constant 0 : i32
    return %arg0, %c0_i32 : i32, i32
  }
  func.func @transform_1(%arg0: i32) -> (i32, i32) {
    %c0_i32 = arith.constant 0 : i32
    %c0_i32_0 = arith.constant 0 : i32
    %c0_i32_1 = arith.constant 0 : i32
    return %c0_i32, %c0_i32_0 : i32, i32
  }
  func.func @transform_2(%arg0: i32) -> (i32, i32) {
    %c0_i32 = arith.constant 0 : i32
    %c0_i32_0 = arith.constant 0 : i32
    %c0_i32_1 = arith.constant 0 : i32
    return %c0_i32, %c0_i32_0 : i32, i32
  }
  func.func @transform_3(%arg0: i32) -> (i32, i32) {
    %c0_i32 = arith.constant 0 : i32
    %c0_i32_0 = arith.constant 0 : i32
    %c0_i32_1 = arith.constant 0 : i32
    return %c0_i32, %c0_i32_0 : i32, i32
  }
  func.func @transform_4(%arg0: i32) -> (i32, i32) {
    %c0_i32 = arith.constant 0 : i32
    %c0_i32_0 = arith.constant 0 : i32
    %c0_i32_1 = arith.constant 0 : i32
    return %c0_i32, %c0_i32_0 : i32, i32
  }
  func.func @transform_5(%arg0: i32) -> (i32, i32) {
    %c0_i32 = arith.constant 0 : i32
    %c0_i32_0 = arith.constant 0 : i32
    %c0_i32_1 = arith.constant 0 : i32
    return %c0_i32, %c0_i32_0 : i32, i32
  }
  func.func @transform_6(%arg0: i32) -> (i32, i32) {
    %c0_i32 = arith.constant 0 : i32
    %c0_i32_0 = arith.constant 0 : i32
    %c0_i32_1 = arith.constant 0 : i32
    return %c0_i32, %c0_i32_0 : i32, i32
  }
  func.func @transform_7(%arg0: i32) -> (i32, i32) {
    %c0_i32 = arith.constant 0 : i32
    %c0_i32_0 = arith.constant 0 : i32
    return %arg0, %c0_i32 : i32, i32
  }
  func.func @transform_8(%arg0: i32) -> (i32, i32) {
    %c0_i32 = arith.constant 0 : i32
    %c0_i32_0 = arith.constant 0 : i32
    return %arg0, %c0_i32 : i32, i32
  }
}

</mosaic_0001>

<bundles_post_ra>
// kernel: tpu_custom_call.1
= control target key start
LH: loop header
LB: loop body
LE: loop exit
PB: predicated region body
PF: predicated region fallthrough
CT: control target
= control target key end

     0   :  { %14 = vsyncpa [#allocation3], 0  ;;  %s758_s0 = inlined_call_operand.hbm [shape: f32[16,32], index: 0, kind: input, shape index: {}]   ;;  %s759_s1 = inlined_call_operand.vmem [shape: f32[1,32], index: 1, kind: input, shape index: {}]   ;;  %s760_s2 = inlined_call_operand.vmem [shape: f32[1,32], index: 2, kind: input, shape index: {}]   ;;  %s761_s3 = inlined_call_operand.hbm [shape: f32[32,128], index: 3, kind: input, shape index: {}]   ;;  %s762_s4 = inlined_call_operand.vmem [shape: f32[1,128], index: 4, kind: input, shape index: {}]   ;;  %s763_s5 = inlined_call_operand.hbm [shape: f32[128,128], index: 5, kind: input, shape index: {}]   ;;  %s764_s6 = inlined_call_operand.vmem [shape: f32[1,128], index: 6, kind: input, shape index: {}]   ;;  %s765_s7 = inlined_call_operand.hbm [shape: f32[16,128], index: 7, kind: output, shape index: {0}]   ;;  %s766_s8 = inlined_call_operand.hbm [shape: f32[16,128], index: 8, kind: output, shape index: {1}]  }
   0x1   :  { %15 = vsyncpa [#allocation6], 0 }
   0x2   :  { %16 = vsyncpa [#allocation4], 0 }
   0x3   :  { %17 = vsyncpa [#allocation10], 0  ;;  %s606_s27 = smov [#allocation5]   ;;  %s607_s29 = smov [#allocation2]  }
   0x4   :  { %s39_s28 = sshll.u32 %s606_s27, 4  ;;  %s23_s30 = sshll.u32 %s607_s29, 4  ;;  %s40_s28 = int_to_ptr.vmem [resolvable:$true] %s39_s28  ;;  %s658_s30 = int_to_ptr.vmem [resolvable:$true] %s23_s30 }
   0x5   :  { %s488_s11 = scalar_lea.hbm %s761_s3, 512 }
   0x6   :  { %p489_p0 = scmp.ne.s32.totalorder %s761_s3, %s488_s11  ;;  %p492_p1 = scmp.lt.u32.totalorder %s488_s11, %s761_s3 }
   0x8   :  { %p494_p2 = pnand %p492_p1, %p489_p0 }
   0xa   :  { %497 = shalt.err (!%p494_p2)
}
   0xb   :  { %s498_s16 = scalar_lea.vmem %s40_s28, 512  ;;  %p503_p4 = scmp.lt.s32.totalorder %s40_s28, %s40_s28 }
   0xc   :  { %p499_p3 = scmp.ne.s32.totalorder %s40_s28, %s498_s16  ;;  %p504_p5 = scmp.lt.s32.totalorder %s498_s16, %s498_s16 }
   0xe   :  { %p505_p6 = por %p504_p5, %p503_p4 }
  0x10   :  { %p506_p7 = pnand %p505_p6, %p499_p3 }
  0x12   :  { %509 = shalt.err (!%p506_p7)
}
  0x13   :  { %s608_s17 = smov 128   ;;  %s609_s18 = smov 8  }
  0x14   :  { %45 = dma.hbm_to_vmem [thread:$0]  %s761_s3, 512, %s40_s28, [#allocation6], %s608_s17, %s608_s17, %s609_s18  }
  0x15   :  { %s510_s23 = scalar_lea.hbm %s758_s0, 256 }
  0x16   :  { %p511_p8 = scmp.ne.s32.totalorder %s758_s0, %s510_s23  ;;  %p514_p9 = scmp.lt.u32.totalorder %s510_s23, %s758_s0 }
  0x18   :  { %p516_p10 = pnand %p514_p9, %p511_p8 }
  0x1a   :  { %519 = shalt.err (!%p516_p10)
}
  0x1b   :  { %s520_s29 = scalar_lea.vmem %s658_s30, 256  ;;  %p525_p12 = scmp.lt.s32.totalorder %s658_s30, %s658_s30 }
  0x1c   :  { %p521_p11 = scmp.ne.s32.totalorder %s658_s30, %s520_s29  ;;  %p526_p13 = scmp.lt.s32.totalorder %s520_s29, %s520_s29 }
  0x1e   :  { %p527_p0 = por %p526_p13, %p525_p12 }
  0x20   :  { %p528_p1 = pnand %p527_p0, %p521_p11 }
  0x22   :  { %531 = shalt.err (!%p528_p1)
}
  0x23   :  { %29 = dma.hbm_to_vmem [thread:$0]  %s758_s0, 256, %s658_s30, [#allocation3], %s608_s17, %s608_s17, %s609_s18  }
  0x24   :  { %s610_s9 = smov [#allocation7]   ;;  %s532_s13 = scalar_lea.hbm %s763_s5, 2048 }
  0x25   :  { %s53_s10 = sshll.u32 %s610_s9, 4  ;;  %p533_p2 = scmp.ne.s32.totalorder %s763_s5, %s532_s13  ;;  %s54_s10 = int_to_ptr.vmem [resolvable:$true] %s53_s10 }
  0x26   :  { %p536_p3 = scmp.lt.u32.totalorder %s532_s13, %s763_s5 }
  0x28   :  { %p538_p4 = pnand %p536_p3, %p533_p2 }
  0x2a   :  { %541 = shalt.err (!%p538_p4)
}
  0x2b   :  { %s542_s20 = scalar_lea.vmem %s54_s10, 2048  ;;  %p547_p6 = scmp.lt.s32.totalorder %s54_s10, %s54_s10 }
  0x2c   :  { %p543_p5 = scmp.ne.s32.totalorder %s54_s10, %s542_s20  ;;  %p548_p7 = scmp.lt.s32.totalorder %s542_s20, %s542_s20 }
  0x2e   :  { %p549_p8 = por %p548_p7, %p547_p6 }
  0x30   :  { %p550_p9 = pnand %p549_p8, %p543_p5 }
  0x32   :  { %553 = shalt.err (!%p550_p9)
}
  0x33   :  { %59 = dma.hbm_to_vmem [thread:$0]  %s763_s5, 2048, %s54_s10, [#allocation6], %s608_s17, %s608_s17, %s609_s18  }
  0x34   :  { %598 = dma.done.wait [#allocation3], 256  }
  0x35   :  { %599 = vsyncadd [#allocation3], 4294967040 }
  0x36   :  { %600 = dma.done.wait [#allocation6], 2560  }
  0x37   :  { %601 = vsyncadd [#allocation6], 4294964736  ;;  %vm75_vm0 = vcmask 261120   ;;  %v71_v0 = vld [vmem:[#allocation2] sm:$0xff]  ;;  %v72_v1 = vld [vmem:[#allocation2 + $0x8] sm:$0xff] }
  0x38   :  { %v76_v2 = vsel %vm75_vm0, %v71_v0, 0.0  ;;  %v79_v3 = vsel %vm75_vm0, %v72_v1, 0.0  ;;  %v119_v14 = vld [vmem:[#allocation5] sm:$0xff]  ;;  %v120_v15 = vld [vmem:[#allocation5 + $0x8] sm:$0xff]  ;;  %v121_v16 = vld [vmem:[#allocation5 + $0x10] sm:$0xff] }
  0x39   :  { %77 = vadd.xlane.f32.xlu0 %v76_v2  ;;  %v433_v17 = vpack.c.bf16 %v120_v15, %v119_v14  ;;  %v122_v18 = vld [vmem:[#allocation5 + $0x18] sm:$0xff]  ;;  %v223_v20 = vld [vmem:[#allocation7] sm:$0xff]  ;;  %v224_v21 = vld [vmem:[#allocation7 + $0x8] sm:$0xff] }
  0x3a   :  { %v437_v19 = vpack.c.bf16 %v122_v18, %v121_v16  ;;  %v225_v22 = vld [vmem:[#allocation7 + $0x10] sm:$0xff]  ;;  %v441_v23 = vpack.c.bf16 %v224_v21, %v223_v20  ;;  %v226_v24 = vld [vmem:[#allocation7 + $0x18] sm:$0xff]  ;;  %v227_v26 = vld [vmem:[#allocation7 + $0x20] sm:$0xff] }
  0x3b   :  { %434 = vmatprep.subr.bf16.mxu0 %v433_v17  ;;  %v445_v25 = vpack.c.bf16 %v226_v24, %v225_v22  ;;  %v228_v27 = vld [vmem:[#allocation7 + $0x28] sm:$0xff]  ;;  %v357_v36 = vld [vmem:[%s759_s1] ss:$0 sm:$0xff]  ;;  %v230_v46 = vld [vmem:[#allocation7 + $0x38] sm:$0xff] }
  0x3c   :  { %436 = vmatpush3.bf16.msra.mxu0 %v433_v17  ;;  %442 = vmatprep.subr.bf16.mxu1 %v441_v23  ;;  %v449_v28 = vpack.c.bf16 %v228_v27, %v227_v26  ;;  %v358_v38 = vld [vmem:[%s760_s2] ss:$0 sm:$0xff]  ;;  %v231_v48 = vld [vmem:[#allocation7 + $0x40] sm:$0xff]  ;;  %v232_v49 = vld [vmem:[#allocation7 + $0x48] sm:$0xff] }
  0x3d   :  { %80 = vadd.xlane.f32.xlu0 %v79_v3  ;;  %438 = vmatprep.subr.bf16.mxu0 %v437_v19  ;;  %v229_v45 = vld [vmem:[#allocation7 + $0x30] sm:$0xff]  ;;  %v457_v50 = vpack.c.bf16 %v232_v49, %v231_v48  ;;  %v234_v52 = vld [vmem:[#allocation7 + $0x58] sm:$0xff]  ;;  %v235_v54 = vld [vmem:[#allocation7 + $0x60] sm:$0xff] }
  0x3e   :  { %444 = vmatpush3.bf16.msra.mxu1 %v441_v23  ;;  %v453_v47 = vpack.c.bf16 %v230_v46, %v229_v45  ;;  %v233_v51 = vld [vmem:[#allocation7 + $0x50] sm:$0xff]  ;;  %v236_v55 = vld [vmem:[#allocation7 + $0x68] sm:$0xff]  ;;  %v238_v58 = vld [vmem:[#allocation7 + $0x78] sm:$0xff] }
  0x3f   :  { %446 = vmatprep.subr.bf16.mxu1 %v445_v25  ;;  %v461_v53 = vpack.c.bf16 %v234_v52, %v233_v51  ;;  %v465_v56 = vpack.c.bf16 %v236_v55, %v235_v54  ;;  %v237_v57 = vld [vmem:[#allocation7 + $0x70] sm:$0xff] }
  0x40   :  { %440 = vmatpush3.bf16.msra.mxu0 %v437_v19  ;;  %v469_v59 = vpack.c.bf16 %v238_v58, %v237_v57  ;;  %v359_v60 = vld [vmem:[%s762_s4] ss:$0 sm:$0xff]  ;;  %s611_s4 = smov [#allocation9]  }
  0x41   :  { %s340_s24 = sshll.u32 %s611_s4, 4  ;;  %s341_s24 = int_to_ptr.vmem [resolvable:$true] %s340_s24 }
  0x42   :  { %448 = vmatpush3.bf16.msra.mxu1 %v445_v25  ;;  %s554_s25 = scalar_lea.vmem %s341_s24, 256  ;;  %p559_p11 = scmp.lt.s32.totalorder %s341_s24, %s341_s24 }
  0x43   :  { %450 = vmatprep.subr.bf16.mxu1 %v449_v28  ;;  %p555_p10 = scmp.ne.s32.totalorder %s341_s24, %s554_s25  ;;  %p560_p12 = scmp.lt.s32.totalorder %s554_s25, %s554_s25 }
  0x45   :  { %p561_p13 = por %p560_p12, %p559_p11 }
  0x46   :  { %452 = vmatpush3.bf16.msra.mxu1 %v449_v28 }
  0x47   :  { %454 = vmatprep.subr.bf16.mxu1 %v453_v47  ;;  %p562_p0 = pnand %p561_p13, %p555_p10 }
  0x4a   :  { %456 = vmatpush3.bf16.msra.mxu1 %v453_v47 }
  0x4b   :  { %458 = vmatprep.subr.bf16.mxu1 %v457_v50 }
  0x4e   :  { %460 = vmatpush3.bf16.msra.mxu1 %v457_v50 }
  0x4f   :  { %462 = vmatprep.subr.bf16.mxu1 %v461_v53 }
  0x52   :  { %464 = vmatpush3.bf16.msra.mxu1 %v461_v53 }
  0x53   :  { %466 = vmatprep.subr.bf16.mxu1 %v465_v56 }
  0x56   :  { %468 = vmatpush3.bf16.msra.mxu1 %v465_v56 }
  0x57   :  { %470 = vmatprep.subr.bf16.mxu1 %v469_v59 }
  0x5a   :  { %472 = vmatpush3.bf16.msra.mxu1 %v469_v59 }
  0xc6   :  { %v78_v4 = vpop.xlane.xlu0 %77 }
  0xc7   :  { %v83_v5 = vmul.f32 0.03125, %v78_v4 }
  0xc9   :  { %v85_v6 = vsub.f32 %v71_v0, %v83_v5 }
  0xca   :  { %v81_v7 = vpop.xlane.xlu0 %80 }
  0xcb   :  { %v84_v8 = vmul.f32 0.03125, %v81_v7  ;;  %v87_v9 = vmul.f32 %v85_v6, %v85_v6 }
  0xcd   :  { %v86_v10 = vsub.f32 %v72_v1, %v84_v8  ;;  %v89_v11 = vsel %vm75_vm0, %v87_v9, 0.0 }
  0xce   :  { %90 = vadd.xlane.f32.xlu1 %v89_v11 }
  0xcf   :  { %v88_v12 = vmul.f32 %v86_v10, %v86_v10 }
  0xd1   :  { %v92_v13 = vsel %vm75_vm0, %v88_v12, 0.0 }
  0xd2   :  { %93 = vadd.xlane.f32.xlu1 %v92_v13 }
 0x15b   :  { %v91_v29 = vpop.xlane.xlu1 %90 }
 0x15c   :  { %v95_v30 = vmul.f32 0.03125, %v91_v29 }
 0x15e   :  { %v97_v31 = vadd.f32 1e-05, %v95_v30 }
 0x15f   :  { %v94_v32 = vpop.xlane.xlu1 %93 }
 0x160   :  { %480 = vrsqrt.f32 %v97_v31  ;;  %v96_v33 = vmul.f32 0.03125, %v94_v32 }
 0x162   :  { %v98_v34 = vadd.f32 1e-05, %v96_v33 }
 0x164   :  { %482 = vrsqrt.f32 %v98_v34 }
 0x16a   :  { %v481_v35 = vpop.eup %480 }
 0x16b   :  { %v101_v37 = vmul.f32 %v481_v35, %v85_v6 }
 0x16d   :  { %v109_v39 = vmul.f32 %v357_v36, %v101_v37 }
 0x16e   :  { %v483_v40 = vpop.eup %482 }
 0x16f   :  { %v102_v41 = vmul.f32 %v483_v40, %v86_v10  ;;  %v117_v42 = vadd.f32 %v358_v38, %v109_v39 }
 0x171   :  { %v110_v43 = vmul.f32 %v357_v36, %v102_v41  ;;  %395 = vmatprep.mubr.msk.f32.mxu0 %vm75_vm0, %v117_v42 }
 0x173   :  { %v118_v44 = vadd.f32 %v358_v38, %v110_v43 }
 0x175   :  { %396 = vmatmul.mubr.msk.f32.vlgmr.msra.gmra.mrb[0].mxu0 %vm75_vm0, %v118_v44 }
 0x248   :  { %v397_v61 = vpop.f32.mrb[0].mxu0 }
 0x249   :  { %v208_v62 = vadd.f32 %v397_v61, %v359_v60  ;;  %v202_v63 = vpop.f32.mrb[1].mxu0 }
 0x24a   :  { %v203_v0 = vadd.f32 %v359_v60, %v202_v63 }
 0x24b   :  { %v214_v1 = vmul.f32 0.70710677, %v208_v62  ;;  %v212_v5 = vmul.f32 0.5, %v208_v62 }
 0x24c   :  { %v213_v2 = vmul.f32 0.70710677, %v203_v0  ;;  %v211_v7 = vmul.f32 0.5, %v203_v0 }
 0x24d   :  { %484 = verf.f32 %v214_v1 }
 0x24e   :  { %486 = verf.f32 %v213_v2 }
 0x257   :  { %v485_v3 = vpop.eup %484 }
 0x258   :  { %v487_v4 = vpop.eup %486  ;;  %v218_v6 = vadd.f32 1.0, %v485_v3 }
 0x259   :  { %v217_v8 = vadd.f32 1.0, %v487_v4 }
 0x25a   :  { %v220_v9 = vmul.f32 %v218_v6, %v212_v5 }
 0x25b   :  { %v219_v10 = vmul.f32 %v217_v8, %v211_v7 }
 0x25c   :  { %222 = vst [vmem:[#allocation9 + $0x8] sm:$0xff] %v220_v9 }
 0x25d   :  { %430 = vmatprep.mubr.f32.mxu1 %v219_v10  ;;  %221 = vst [vmem:[#allocation9] sm:$0xff] %v219_v10 }
 0x25e   :  { %431 = vmatmul.mubr.f32.vlgmr.msra.gmra.mrb[0].mxu1 %v220_v9 }
 0x25f   :  { %565 = shalt.err (!%p562_p0)
}
 0x260   :  { %s566_s29 = scalar_lea.hbm %s766_s8, 256 }
 0x261   :  { %p567_p1 = scmp.ne.s32.totalorder %s766_s8, %s566_s29  ;;  %p570_p2 = scmp.lt.u32.totalorder %s566_s29, %s766_s8 }
 0x263   :  { %p572_p3 = pnand %p570_p2, %p567_p1 }
 0x265   :  { %575 = shalt.err (!%p572_p3)
}
 0x266   :  { %346 = dma.vmem_to_hbm [thread:$0]  %s341_s24, 256, %s766_s8, [#allocation10], %s608_s17, %s608_s17, %s609_s18  }
 0x267   :  { %v362_v11 = vld [vmem:[%s764_s6] ss:$0 sm:$0xff]  ;;  %s612_s15 = smov [#allocation8]  }
 0x268   :  { %s328_s16 = sshll.u32 %s612_s15, 4  ;;  %s329_s16 = int_to_ptr.vmem [resolvable:$true] %s328_s16 }
 0x269   :  { %s576_s19 = scalar_lea.vmem %s329_s16, 256  ;;  %p581_p5 = scmp.lt.s32.totalorder %s329_s16, %s329_s16 }
 0x26a   :  { %p577_p4 = scmp.ne.s32.totalorder %s329_s16, %s576_s19  ;;  %p582_p6 = scmp.lt.s32.totalorder %s576_s19, %s576_s19 }
 0x26c   :  { %p583_p7 = por %p582_p6, %p581_p5 }
 0x26e   :  { %p584_p8 = pnand %p583_p7, %p577_p4 }
 0x331   :  { %v432_v12 = vpop.f32.mrb[0].mxu1 }
 0x332   :  { %v318_v13 = vadd.f32 %v432_v12, %v362_v11  ;;  %v312_v14 = vpop.f32.mrb[1].mxu1 }
 0x333   :  { %v313_v15 = vadd.f32 %v362_v11, %v312_v14 }
 0x334   :  { %322 = vst [vmem:[#allocation8 + $0x8] sm:$0xff] %v318_v13 }
 0x335   :  { %321 = vst [vmem:[#allocation8] sm:$0xff] %v313_v15 }
 0x336   :  { %587 = shalt.err (!%p584_p8)
}
 0x337   :  { %s588_s6 = scalar_lea.hbm %s765_s7, 256 }
 0x338   :  { %p589_p9 = scmp.ne.s32.totalorder %s765_s7, %s588_s6  ;;  %p592_p10 = scmp.lt.u32.totalorder %s588_s6, %s765_s7 }
 0x33a   :  { %p594_p11 = pnand %p592_p10, %p589_p9 }
 0x33c   :  { %597 = shalt.err (!%p594_p11)
}
 0x33d   :  { %334 = dma.vmem_to_hbm [thread:$0]  %s329_s16, 256, %s765_s7, [#allocation4], %s608_s17, %s608_s17, %s609_s18  }
 0x33e   :  { %602 = dma.done.wait [#allocation4], 256  }
 0x33f   :  { %603 = vsyncadd [#allocation4], 4294967040 }
 0x340   :  { %604 = dma.done.wait [#allocation10], 256  }
 0x341   :  { %605 = vsyncadd [#allocation10], 4294967040 }
 0x342   :  { %353 = vsyncpa [#allocation3], 1 }
 0x343   :  { %354 = vsyncpa [#allocation6], 1 }
 0x344   :  { %355 = vsyncpa [#allocation4], 1 }
 0x345   :  { %356 = vsyncpa [#allocation10], 1 }

// kernel: tpu_custom_call.1
= control target key start
LH: loop header
LB: loop body
LE: loop exit
PB: predicated region body
PF: predicated region fallthrough
CT: control target
= control target key end

     0   :  { %14 = vsyncpa [#allocation3], 0  ;;  %s758_s0 = inlined_call_operand.hbm [shape: f32[16,32], index: 0, kind: input, shape index: {}]   ;;  %s759_s1 = inlined_call_operand.vmem [shape: f32[1,32], index: 1, kind: input, shape index: {}]   ;;  %s760_s2 = inlined_call_operand.vmem [shape: f32[1,32], index: 2, kind: input, shape index: {}]   ;;  %s761_s3 = inlined_call_operand.hbm [shape: f32[32,128], index: 3, kind: input, shape index: {}]   ;;  %s762_s4 = inlined_call_operand.vmem [shape: f32[1,128], index: 4, kind: input, shape index: {}]   ;;  %s763_s5 = inlined_call_operand.hbm [shape: f32[128,128], index: 5, kind: input, shape index: {}]   ;;  %s764_s6 = inlined_call_operand.vmem [shape: f32[1,128], index: 6, kind: input, shape index: {}]   ;;  %s765_s7 = inlined_call_operand.hbm [shape: f32[16,128], index: 7, kind: output, shape index: {0}]   ;;  %s766_s8 = inlined_call_operand.hbm [shape: f32[16,128], index: 8, kind: output, shape index: {1}]  }
   0x1   :  { %15 = vsyncpa [#allocation6], 0 }
   0x2   :  { %16 = vsyncpa [#allocation4], 0 }
   0x3   :  { %17 = vsyncpa [#allocation10], 0  ;;  %s606_s27 = smov [#allocation5]   ;;  %s607_s29 = smov [#allocation2]  }
   0x4   :  { %s39_s28 = sshll.u32 %s606_s27, 4  ;;  %s23_s30 = sshll.u32 %s607_s29, 4  ;;  %s40_s28 = int_to_ptr.vmem [resolvable:$true] %s39_s28  ;;  %s658_s30 = int_to_ptr.vmem [resolvable:$true] %s23_s30 }
   0x5   :  { %s488_s11 = scalar_lea.hbm %s761_s3, 512 }
   0x6   :  { %p489_p0 = scmp.ne.s32.totalorder %s761_s3, %s488_s11  ;;  %p492_p1 = scmp.lt.u32.totalorder %s488_s11, %s761_s3 }
   0x8   :  { %p494_p2 = pnand %p492_p1, %p489_p0 }
   0xa   :  { %497 = shalt.err (!%p494_p2)
}
   0xb   :  { %s498_s16 = scalar_lea.vmem %s40_s28, 512  ;;  %p503_p4 = scmp.lt.s32.totalorder %s40_s28, %s40_s28 }
   0xc   :  { %p499_p3 = scmp.ne.s32.totalorder %s40_s28, %s498_s16  ;;  %p504_p5 = scmp.lt.s32.totalorder %s498_s16, %s498_s16 }
   0xe   :  { %p505_p6 = por %p504_p5, %p503_p4 }
  0x10   :  { %p506_p7 = pnand %p505_p6, %p499_p3 }
  0x12   :  { %509 = shalt.err (!%p506_p7)
}
  0x13   :  { %s608_s17 = smov 128   ;;  %s609_s18 = smov 8  }
  0x14   :  { %45 = dma.hbm_to_vmem [thread:$0]  %s761_s3, 512, %s40_s28, [#allocation6], %s608_s17, %s608_s17, %s609_s18  }
  0x15   :  { %s510_s23 = scalar_lea.hbm %s758_s0, 256 }
  0x16   :  { %p511_p8 = scmp.ne.s32.totalorder %s758_s0, %s510_s23  ;;  %p514_p9 = scmp.lt.u32.totalorder %s510_s23, %s758_s0 }
  0x18   :  { %p516_p10 = pnand %p514_p9, %p511_p8 }
  0x1a   :  { %519 = shalt.err (!%p516_p10)
}
  0x1b   :  { %s520_s29 = scalar_lea.vmem %s658_s30, 256  ;;  %p525_p12 = scmp.lt.s32.totalorder %s658_s30, %s658_s30 }
  0x1c   :  { %p521_p11 = scmp.ne.s32.totalorder %s658_s30, %s520_s29  ;;  %p526_p13 = scmp.lt.s32.totalorder %s520_s29, %s520_s29 }
  0x1e   :  { %p527_p0 = por %p526_p13, %p525_p12 }
  0x20   :  { %p528_p1 = pnand %p527_p0, %p521_p11 }
  0x22   :  { %531 = shalt.err (!%p528_p1)
}
  0x23   :  { %29 = dma.hbm_to_vmem [thread:$0]  %s758_s0, 256, %s658_s30, [#allocation3], %s608_s17, %s608_s17, %s609_s18  }
  0x24   :  { %s610_s9 = smov [#allocation7]   ;;  %s532_s13 = scalar_lea.hbm %s763_s5, 2048 }
  0x25   :  { %s53_s10 = sshll.u32 %s610_s9, 4  ;;  %p533_p2 = scmp.ne.s32.totalorder %s763_s5, %s532_s13  ;;  %s54_s10 = int_to_ptr.vmem [resolvable:$true] %s53_s10 }
  0x26   :  { %p536_p3 = scmp.lt.u32.totalorder %s532_s13, %s763_s5 }
  0x28   :  { %p538_p4 = pnand %p536_p3, %p533_p2 }
  0x2a   :  { %541 = shalt.err (!%p538_p4)
}
  0x2b   :  { %s542_s20 = scalar_lea.vmem %s54_s10, 2048  ;;  %p547_p6 = scmp.lt.s32.totalorder %s54_s10, %s54_s10 }
  0x2c   :  { %p543_p5 = scmp.ne.s32.totalorder %s54_s10, %s542_s20  ;;  %p548_p7 = scmp.lt.s32.totalorder %s542_s20, %s542_s20 }
  0x2e   :  { %p549_p8 = por %p548_p7, %p547_p6 }
  0x30   :  { %p550_p9 = pnand %p549_p8, %p543_p5 }
  0x32   :  { %553 = shalt.err (!%p550_p9)
}
  0x33   :  { %59 = dma.hbm_to_vmem [thread:$0]  %s763_s5, 2048, %s54_s10, [#allocation6], %s608_s17, %s608_s17, %s609_s18  }
  0x34   :  { %598 = dma.done.wait [#allocation3], 256  }
  0x35   :  { %599 = vsyncadd [#allocation3], 4294967040 }
  0x36   :  { %600 = dma.done.wait [#allocation6], 2560  }
  0x37   :  { %601 = vsyncadd [#allocation6], 4294964736  ;;  %vm75_vm0 = vcmask 261120   ;;  %v71_v0 = vld [vmem:[#allocation2] sm:$0xff]  ;;  %v72_v1 = vld [vmem:[#allocation2 + $0x8] sm:$0xff] }
  0x38   :  { %v76_v2 = vsel %vm75_vm0, %v71_v0, 0.0  ;;  %v79_v3 = vsel %vm75_vm0, %v72_v1, 0.0  ;;  %v119_v14 = vld [vmem:[#allocation5] sm:$0xff]  ;;  %v120_v15 = vld [vmem:[#allocation5 + $0x8] sm:$0xff]  ;;  %v121_v16 = vld [vmem:[#allocation5 + $0x10] sm:$0xff] }
  0x39   :  { %77 = vadd.xlane.f32.xlu0 %v76_v2  ;;  %v433_v17 = vpack.c.bf16 %v120_v15, %v119_v14  ;;  %v122_v18 = vld [vmem:[#allocation5 + $0x18] sm:$0xff]  ;;  %v223_v20 = vld [vmem:[#allocation7] sm:$0xff]  ;;  %v224_v21 = vld [vmem:[#allocation7 + $0x8] sm:$0xff] }
  0x3a   :  { %v437_v19 = vpack.c.bf16 %v122_v18, %v121_v16  ;;  %v225_v22 = vld [vmem:[#allocation7 + $0x10] sm:$0xff]  ;;  %v441_v23 = vpack.c.bf16 %v224_v21, %v223_v20  ;;  %v226_v24 = vld [vmem:[#allocation7 + $0x18] sm:$0xff]  ;;  %v227_v26 = vld [vmem:[#allocation7 + $0x20] sm:$0xff] }
  0x3b   :  { %434 = vmatprep.subr.bf16.mxu0 %v433_v17  ;;  %v445_v25 = vpack.c.bf16 %v226_v24, %v225_v22  ;;  %v228_v27 = vld [vmem:[#allocation7 + $0x28] sm:$0xff]  ;;  %v357_v36 = vld [vmem:[%s759_s1] ss:$0 sm:$0xff]  ;;  %v230_v46 = vld [vmem:[#allocation7 + $0x38] sm:$0xff] }
  0x3c   :  { %436 = vmatpush3.bf16.msra.mxu0 %v433_v17  ;;  %442 = vmatprep.subr.bf16.mxu1 %v441_v23  ;;  %v449_v28 = vpack.c.bf16 %v228_v27, %v227_v26  ;;  %v358_v38 = vld [vmem:[%s760_s2] ss:$0 sm:$0xff]  ;;  %v231_v48 = vld [vmem:[#allocation7 + $0x40] sm:$0xff]  ;;  %v232_v49 = vld [vmem:[#allocation7 + $0x48] sm:$0xff] }
  0x3d   :  { %80 = vadd.xlane.f32.xlu0 %v79_v3  ;;  %438 = vmatprep.subr.bf16.mxu0 %v437_v19  ;;  %v229_v45 = vld [vmem:[#allocation7 + $0x30] sm:$0xff]  ;;  %v457_v50 = vpack.c.bf16 %v232_v49, %v231_v48  ;;  %v234_v52 = vld [vmem:[#allocation7 + $0x58] sm:$0xff]  ;;  %v235_v54 = vld [vmem:[#allocation7 + $0x60] sm:$0xff] }
  0x3e   :  { %444 = vmatpush3.bf16.msra.mxu1 %v441_v23  ;;  %v453_v47 = vpack.c.bf16 %v230_v46, %v229_v45  ;;  %v233_v51 = vld [vmem:[#allocation7 + $0x50] sm:$0xff]  ;;  %v236_v55 = vld [vmem:[#allocation7 + $0x68] sm:$0xff]  ;;  %v238_v58 = vld [vmem:[#allocation7 + $0x78] sm:$0xff] }
  0x3f   :  { %446 = vmatprep.subr.bf16.mxu1 %v445_v25  ;;  %v461_v53 = vpack.c.bf16 %v234_v52, %v233_v51  ;;  %v465_v56 = vpack.c.bf16 %v236_v55, %v235_v54  ;;  %v237_v57 = vld [vmem:[#allocation7 + $0x70] sm:$0xff] }
  0x40   :  { %440 = vmatpush3.bf16.msra.mxu0 %v437_v19  ;;  %v469_v59 = vpack.c.bf16 %v238_v58, %v237_v57  ;;  %v359_v60 = vld [vmem:[%s762_s4] ss:$0 sm:$0xff]  ;;  %s611_s4 = smov [#allocation9]  }
  0x41   :  { %s340_s24 = sshll.u32 %s611_s4, 4  ;;  %s341_s24 = int_to_ptr.vmem [resolvable:$true] %s340_s24 }
  0x42   :  { %448 = vmatpush3.bf16.msra.mxu1 %v445_v25  ;;  %s554_s25 = scalar_lea.vmem %s341_s24, 256  ;;  %p559_p11 = scmp.lt.s32.totalorder %s341_s24, %s341_s24 }
  0x43   :  { %450 = vmatprep.subr.bf16.mxu1 %v449_v28  ;;  %p555_p10 = scmp.ne.s32.totalorder %s341_s24, %s554_s25  ;;  %p560_p12 = scmp.lt.s32.totalorder %s554_s25, %s554_s25 }
  0x45   :  { %p561_p13 = por %p560_p12, %p559_p11 }
  0x46   :  { %452 = vmatpush3.bf16.msra.mxu1 %v449_v28 }
  0x47   :  { %454 = vmatprep.subr.bf16.mxu1 %v453_v47  ;;  %p562_p0 = pnand %p561_p13, %p555_p10 }
  0x4a   :  { %456 = vmatpush3.bf16.msra.mxu1 %v453_v47 }
  0x4b   :  { %458 = vmatprep.subr.bf16.mxu1 %v457_v50 }
  0x4e   :  { %460 = vmatpush3.bf16.msra.mxu1 %v457_v50 }
  0x4f   :  { %462 = vmatprep.subr.bf16.mxu1 %v461_v53 }
  0x52   :  { %464 = vmatpush3.bf16.msra.mxu1 %v461_v53 }
  0x53   :  { %466 = vmatprep.subr.bf16.mxu1 %v465_v56 }
  0x56   :  { %468 = vmatpush3.bf16.msra.mxu1 %v465_v56 }
  0x57   :  { %470 = vmatprep.subr.bf16.mxu1 %v469_v59 }
  0x5a   :  { %472 = vmatpush3.bf16.msra.mxu1 %v469_v59 }
  0xc6   :  { %v78_v4 = vpop.xlane.xlu0 %77 }
  0xc7   :  { %v83_v5 = vmul.f32 0.03125, %v78_v4 }
  0xc9   :  { %v85_v6 = vsub.f32 %v71_v0, %v83_v5 }
  0xca   :  { %v81_v7 = vpop.xlane.xlu0 %80 }
  0xcb   :  { %v84_v8 = vmul.f32 0.03125, %v81_v7  ;;  %v87_v9 = vmul.f32 %v85_v6, %v85_v6 }
  0xcd   :  { %v86_v10 = vsub.f32 %v72_v1, %v84_v8  ;;  %v89_v11 = vsel %vm75_vm0, %v87_v9, 0.0 }
  0xce   :  { %90 = vadd.xlane.f32.xlu1 %v89_v11 }
  0xcf   :  { %v88_v12 = vmul.f32 %v86_v10, %v86_v10 }
  0xd1   :  { %v92_v13 = vsel %vm75_vm0, %v88_v12, 0.0 }
  0xd2   :  { %93 = vadd.xlane.f32.xlu1 %v92_v13 }
 0x15b   :  { %v91_v29 = vpop.xlane.xlu1 %90 }
 0x15c   :  { %v95_v30 = vmul.f32 0.03125, %v91_v29 }
 0x15e   :  { %v97_v31 = vadd.f32 1e-05, %v95_v30 }
 0x15f   :  { %v94_v32 = vpop.xlane.xlu1 %93 }
 0x160   :  { %480 = vrsqrt.f32 %v97_v31  ;;  %v96_v33 = vmul.f32 0.03125, %v94_v32 }
 0x162   :  { %v98_v34 = vadd.f32 1e-05, %v96_v33 }
 0x164   :  { %482 = vrsqrt.f32 %v98_v34 }
 0x16a   :  { %v481_v35 = vpop.eup %480 }
 0x16b   :  { %v101_v37 = vmul.f32 %v481_v35, %v85_v6 }
 0x16d   :  { %v109_v39 = vmul.f32 %v357_v36, %v101_v37 }
 0x16e   :  { %v483_v40 = vpop.eup %482 }
 0x16f   :  { %v102_v41 = vmul.f32 %v483_v40, %v86_v10  ;;  %v117_v42 = vadd.f32 %v358_v38, %v109_v39 }
 0x171   :  { %v110_v43 = vmul.f32 %v357_v36, %v102_v41  ;;  %395 = vmatprep.mubr.msk.f32.mxu0 %vm75_vm0, %v117_v42 }
 0x173   :  { %v118_v44 = vadd.f32 %v358_v38, %v110_v43 }
 0x175   :  { %396 = vmatmul.mubr.msk.f32.vlgmr.msra.gmra.mrb[0].mxu0 %vm75_vm0, %v118_v44 }
 0x248   :  { %v397_v61 = vpop.f32.mrb[0].mxu0 }
 0x249   :  { %v208_v62 = vadd.f32 %v397_v61, %v359_v60  ;;  %v202_v63 = vpop.f32.mrb[1].mxu0 }
 0x24a   :  { %v203_v0 = vadd.f32 %v359_v60, %v202_v63 }
 0x24b   :  { %v214_v1 = vmul.f32 0.70710677, %v208_v62  ;;  %v212_v5 = vmul.f32 0.5, %v208_v62 }
 0x24c   :  { %v213_v2 = vmul.f32 0.70710677, %v203_v0  ;;  %v211_v7 = vmul.f32 0.5, %v203_v0 }
 0x24d   :  { %484 = verf.f32 %v214_v1 }
 0x24e   :  { %486 = verf.f32 %v213_v2 }
 0x257   :  { %v485_v3 = vpop.eup %484 }
 0x258   :  { %v487_v4 = vpop.eup %486  ;;  %v218_v6 = vadd.f32 1.0, %v485_v3 }
 0x259   :  { %v217_v8 = vadd.f32 1.0, %v487_v4 }
 0x25a   :  { %v220_v9 = vmul.f32 %v218_v6, %v212_v5 }
 0x25b   :  { %v219_v10 = vmul.f32 %v217_v8, %v211_v7 }
 0x25c   :  { %222 = vst [vmem:[#allocation9 + $0x8] sm:$0xff] %v220_v9 }
 0x25d   :  { %430 = vmatprep.mubr.f32.mxu1 %v219_v10  ;;  %221 = vst [vmem:[#allocation9] sm:$0xff] %v219_v10 }
 0x25e   :  { %431 = vmatmul.mubr.f32.vlgmr.msra.gmra.mrb[0].mxu1 %v220_v9 }
 0x25f   :  { %565 = shalt.err (!%p562_p0)
}
 0x260   :  { %s566_s29 = scalar_lea.hbm %s766_s8, 256 }
 0x261   :  { %p567_p1 = scmp.ne.s32.totalorder %s766_s8, %s566_s29  ;;  %p570_p2 = scmp.lt.u32.totalorder %s566_s29, %s766_s8 }
 0x263   :  { %p572_p3 = pnand %p570_p2, %p567_p1 }
 0x265   :  { %575 = shalt.err (!%p572_p3)
}
 0x266   :  { %346 = dma.vmem_to_hbm [thread:$0]  %s341_s24, 256, %s766_s8, [#allocation10], %s608_s17, %s608_s17, %s609_s18  }
 0x267   :  { %v362_v11 = vld [vmem:[%s764_s6] ss:$0 sm:$0xff]  ;;  %s612_s15 = smov [#allocation8]  }
 0x268   :  { %s328_s16 = sshll.u32 %s612_s15, 4  ;;  %s329_s16 = int_to_ptr.vmem [resolvable:$true] %s328_s16 }
 0x269   :  { %s576_s19 = scalar_lea.vmem %s329_s16, 256  ;;  %p581_p5 = scmp.lt.s32.totalorder %s329_s16, %s329_s16 }
 0x26a   :  { %p577_p4 = scmp.ne.s32.totalorder %s329_s16, %s576_s19  ;;  %p582_p6 = scmp.lt.s32.totalorder %s576_s19, %s576_s19 }
 0x26c   :  { %p583_p7 = por %p582_p6, %p581_p5 }
 0x26e   :  { %p584_p8 = pnand %p583_p7, %p577_p4 }
 0x331   :  { %v432_v12 = vpop.f32.mrb[0].mxu1 }
 0x332   :  { %v318_v13 = vadd.f32 %v432_v12, %v362_v11  ;;  %v312_v14 = vpop.f32.mrb[1].mxu1 }
 0x333   :  { %v313_v15 = vadd.f32 %v362_v11, %v312_v14 }
 0x334   :  { %322 = vst [vmem:[#allocation8 + $0x8] sm:$0xff] %v318_v13 }
 0x335   :  { %321 = vst [vmem:[#allocation8] sm:$0xff] %v313_v15 }
 0x336   :  { %587 = shalt.err (!%p584_p8)
}
 0x337   :  { %s588_s6 = scalar_lea.hbm %s765_s7, 256 }
 0x338   :  { %p589_p9 = scmp.ne.s32.totalorder %s765_s7, %s588_s6  ;;  %p592_p10 = scmp.lt.u32.totalorder %s588_s6, %s765_s7 }
 0x33a   :  { %p594_p11 = pnand %p592_p10, %p589_p9 }
 0x33c   :  { %597 = shalt.err (!%p594_p11)
}
 0x33d   :  { %334 = dma.vmem_to_hbm [thread:$0]  %s329_s16, 256, %s765_s7, [#allocation4], %s608_s17, %s608_s17, %s609_s18  }
 0x33e   :  { %602 = dma.done.wait [#allocation4], 256  }
 0x33f   :  { %603 = vsyncadd [#allocation4], 4294967040 }
 0x340   :  { %604 = dma.done.wait [#allocation10], 256  }
 0x341   :  { %605 = vsyncadd [#allocation10], 4294967040 }
 0x342   :  { %353 = vsyncpa [#allocation3], 1 }
 0x343   :  { %354 = vsyncpa [#allocation6], 1 }
 0x344   :  { %355 = vsyncpa [#allocation4], 1 }
 0x345   :  { %356 = vsyncpa [#allocation10], 1 }

</bundles_post_ra>
